<compile_context>
chip_gen: v5e
topology: v5e:2x2
jax: 0.10.0
libtpu: 0.0.40
codegen_flags: <defaults>
</compile_context>

<pallas_src>
import functools

import jax
import jax.numpy as jnp
from jax.experimental import pallas as pl
from jax.experimental.pallas import tpu as pltpu


# Which input path the last trace used ("bitcast-view" or "planar-fallback").
# Exposed so a silent switch to the extra-HBM-pass fallback stays visible.
L2NORMC_INPUT_PATH = None


# ---------------------------------------------------------------------------
# Kernel: per-block sum over the channel axis of squared values.
#   x_ref: (Bb, CC, T) float32   ->   o_ref: (Bb, 1, T) float32
# The reduction never mixes lanes, so padded tail lanes only ever feed padded
# (masked) output lanes.
# ---------------------------------------------------------------------------
def _make_sumsq_kernel(CC):
    CH = 8  # one sublane tile of channels per accumulation step

    def kernel(x_ref, o_ref):
        Bb = x_ref.shape[0]
        T = x_ref.shape[-1]
        acc = jnp.zeros((Bb, 1, T), jnp.float32)

        n_full = CC // CH
        if 0 < n_full <= 8:
            # Short channel loop: static unroll.
            for i in range(n_full):
                xc = x_ref[:, i * CH:(i + 1) * CH, :]
                acc = acc + jnp.sum(xc * xc, axis=1, keepdims=True)
        elif n_full > 8:
            # Chunked accumulation bounds the live range (no block-sized temp).
            def body(i, a):
                c0 = pl.multiple_of(i * CH, CH)
                xc = x_ref[:, pl.ds(c0, CH), :]
                return a + jnp.sum(xc * xc, axis=1, keepdims=True)
            acc = jax.lax.fori_loop(0, n_full, body, acc)

        rem = CC - n_full * CH
        if rem > 0:
            xt = x_ref[:, n_full * CH:CC, :]
            acc = acc + jnp.sum(xt * xt, axis=1, keepdims=True)

        o_ref[...] = acc

    return kernel


# ---------------------------------------------------------------------------
# Block planning (generation-aware, HBM-streaming oriented).
# ---------------------------------------------------------------------------
def _plan_blocks(B, CC, L):
    """Pick (Bb, T, n_b, n_t, vmem_limit) for a [B, CC, L] float32 array."""
    try:
        vmem_cap = getattr(pltpu.get_tpu_info(), "vmem_capacity_bytes", None)
    except Exception:
        vmem_cap = None
    if vmem_cap is None:
        vmem_cap = 64 * 1024 * 1024                 # conservative (v7x-sized)

    if vmem_cap >= 128 * 1024 * 1024:               # v5e / v6e
        gen_block_budget = 8 * 1024 * 1024
        vmem_limit = 64 * 1024 * 1024
    else:                                           # v7x (64 MiB physical)
        gen_block_budget = 6 * 1024 * 1024
        vmem_limit = 40 * 1024 * 1024

    col_bytes = 4 * CC                              # one 128-lane-col / 128
    per_batch_bytes = col_bytes * L
    total_bytes = B * per_batch_bytes

    # Aim for >= 8 grid steps when the data allows, but never shrink blocks
    # below ~512 KiB (streaming hits ~85% of HBM roofline at >= 0.5 MiB).
    budget = min(gen_block_budget, max(512 * 1024, total_bytes // 8))
    budget = max(budget, col_bytes * 128)           # at least one 128-lane tile

    if per_batch_bytes >= budget or B == 1:
        # Tile the lane axis within a single batch element.
        Bb = 1
        max_lanes = max(128, (budget // col_bytes) // 128 * 128)
        if L <= max_lanes:
            T = L
        else:
            T = next((t for t in range(max_lanes, 127, -128) if L % t == 0),
                     max_lanes)                      # else masked tail (safe)
    else:
        # One batch element is small: full lane axis, pack batch elements.
        T = L
        Bb = max(1, min(B, budget // per_batch_bytes))
        while B % Bb:                                # prefer an even split
            Bb -= 1

    n_b = pl.cdiv(B, Bb)
    n_t = pl.cdiv(L, T)
    # v7x has two TensorCores sharing HBM: make sure both get work if we can.
    if n_b * n_t < 2:
        if B >= 2:
            Bb = max(1, B // 2)
            while B % Bb:
                Bb -= 1
        elif T >= 256:
            T = ((T // 2 + 127) // 128) * 128
        n_b = pl.cdiv(B, Bb)
        n_t = pl.cdiv(L, T)
    return Bb, T, n_b, n_t, vmem_limit


# ---------------------------------------------------------------------------
# Input packing: complex64 [B,C,H,W] -> float32 [B, CC, LL] for the kernel.
# ---------------------------------------------------------------------------
def _pack_for_kernel(x_c64):
    global L2NORMC_INPUT_PATH
    B, C, H, W = x_c64.shape
    N = H * W
    try:
        # Zero-copy view: trailing size-2 axis holds (re, im) of each element.
        xf = jax.lax.bitcast_convert_type(x_c64, jnp.float32)   # [B,C,H,W,2]
        L2NORMC_INPUT_PATH = "bitcast-view"
        return xf.reshape(B, C, 2 * N), True                    # interleaved
    except Exception:
        # Cheaper planar fallback (one extra HBM pass): stack re/im on the
        # channel axis so the same kernel reduces over 2*C and the output is
        # already de-interleaved (no pair-combine epilogue needed).
        L2NORMC_INPUT_PATH = "planar-fallback"
        xf = jnp.concatenate([jnp.real(x_c64), jnp.imag(x_c64)], axis=1)
        return xf.reshape(B, 2 * C, N), False


# ---------------------------------------------------------------------------
# Public entry point.
# ---------------------------------------------------------------------------
@functools.partial(jax.jit, static_argnums=(1,))
def _l2normc_impl(x_c64, eps):
    B, C, H, W = x_c64.shape
    N = H * W

    x_f, interleaved = _pack_for_kernel(x_c64)          # [B, CC, LL] float32
    _, CC, LL = x_f.shape
    Bb, T, n_b, n_t, vmem_limit = _plan_blocks(B, CC, LL)

    sums = pl.pallas_call(
        _make_sumsq_kernel(CC),
        out_shape=jax.ShapeDtypeStruct((B, 1, LL), jnp.float32),
        grid=(n_b, n_t),
        in_specs=[pl.BlockSpec((Bb, CC, T), lambda b, t: (b, 0, t))],
        out_specs=pl.BlockSpec((Bb, 1, T), lambda b, t: (b, 0, t)),
        compiler_params=pltpu.CompilerParams(
            dimension_semantics=("parallel", "parallel"),
            vmem_limit_bytes=vmem_limit,
        ),
    )(x_f)

    # Tiny epilogue on the already C-reduced partial sums; under this jit the
    # reshape + sum + add + sqrt fuse into a single XLA pass.
    if interleaved:
        nsq = sums.reshape(B, 1, N, 2).sum(axis=-1)      # pair re^2/im^2 sums
    else:
        nsq = sums.reshape(B, 1, N)                      # already combined
    norm = jnp.sqrt(eps + nsq)
    return norm.reshape(B, 1, H, W)


def l2normc(x_complex, dim=1, keep_dims=True, eps=1e-10):
    """Pallas implementation of L2NormC (dim=1, keep_dims=True only)."""
    assert dim == 1 and keep_dims, "kernel specialized to dim=1, keep_dims=True"
    if x_complex.dtype != jnp.complex64:
        x_complex = x_complex.astype(jnp.complex64)
    return _l2normc_impl(x_complex, float(eps))


def l2normc_ref(x_complex, eps=1e-10):
    re = jnp.real(x_complex).astype(jnp.float32)
    im = jnp.imag(x_complex).astype(jnp.float32)
    return jnp.sqrt(eps + jnp.sum(re * re + im * im, axis=1, keepdims=True))


if __name__ == "__main__":
    key = jax.random.PRNGKey(0)
    k_re, k_im = jax.random.split(key)
    B, C, H, W = 2, 4, 16, 16
    re = jax.random.normal(k_re, (B, C, H, W), dtype=jnp.float32)
    im = jax.random.normal(k_im, (B, C, H, W), dtype=jnp.float32)
    x = (re + 1j * im).astype(jnp.complex64)     # complex NCHW, mirrors torch

    out = l2normc(x)
    jax.block_until_ready(out)

    ref = l2normc_ref(x)
    assert out.shape == (B, 1, H, W), out.shape
    assert out.dtype == jnp.float32, out.dtype
    assert jnp.allclose(out, ref, atol=1e-5, rtol=1e-5), "mismatch vs reference"

    print("KERNEL_OK")
</pallas_src>

<mosaic_0001>
module attributes {stable_mosaic.version = 11 : i64} {
  func.func @kernel(%arg0: i32, %arg1: i32, %arg2: memref<1x8x256xf32, #tpu.memory_space<vmem>>, %arg3: memref<1x1x256xf32, #tpu.memory_space<vmem>>) attributes {dimension_semantics = [#tpu.dimension_semantics<parallel>, #tpu.dimension_semantics<parallel>], iteration_bounds = array<i64: 2, 1>, scalar_prefetch = 0 : i64, scratch_operands = 0 : i64, tpu.core_type = #tpu.core_type<tc>, window_params = [{transform_indices = @transform_0, window_bounds = array<i64: 1, 8, 256>}, {transform_indices = @transform_1, window_bounds = array<i64: 1, 1, 256>}]} {
    %cst = arith.constant 0.000000e+00 : f32
    %0 = vector.broadcast %cst : f32 to vector<1x1x256xf32>
    %c0 = arith.constant 0 : index
    %c0_0 = arith.constant 0 : index
    %c0_1 = arith.constant 0 : index
    %1 = vector.load %arg2[%c0, %c0_0, %c0_1] : memref<1x8x256xf32, #tpu.memory_space<vmem>>, vector<1x8x256xf32>
    %2 = arith.mulf %1, %1 : vector<1x8x256xf32>
    %cst_2 = arith.constant dense<0.000000e+00> : vector<1x256xf32>
    %3 = vector.multi_reduction <add>, %2, %cst_2 [1] : vector<1x8x256xf32> to vector<1x256xf32>
    %4 = vector.shape_cast %3 : vector<1x256xf32> to vector<1x1x256xf32>
    %5 = arith.addf %0, %4 : vector<1x1x256xf32>
    %c0_3 = arith.constant 0 : index
    %c0_4 = arith.constant 0 : index
    %c0_5 = arith.constant 0 : index
    %6 = vector.load %arg3[%c0_3, %c0_4, %c0_5] : memref<1x1x256xf32, #tpu.memory_space<vmem>>, vector<1x1x256xf32>
    tpu.vector_store %arg3[%c0_3, %c0_4, %c0_5], %5 {strides = array<i32>} : memref<1x1x256xf32, #tpu.memory_space<vmem>>, vector<1x1x256xf32>,
    return
  }
  func.func @transform_0(%arg0: i32, %arg1: i32) -> (i32, i32, i32) {
    %c0_i32 = arith.constant 0 : i32
    %c0_i32_0 = arith.constant 0 : i32
    return %arg0, %c0_i32, %arg1 : i32, i32, i32
  }
  func.func @transform_1(%arg0: i32, %arg1: i32) -> (i32, i32, i32) {
    %c0_i32 = arith.constant 0 : i32
    %c0_i32_0 = arith.constant 0 : i32
    return %arg0, %c0_i32, %arg1 : i32, i32, i32
  }
}

</mosaic_0001>

<bundles_post_ra>
// kernel: custom-call.1
= control target key start
LH: loop header
LB: loop body
LE: loop exit
PB: predicated region body
PF: predicated region fallthrough
CT: control target
= control target key end

     0   :  { %s56_s0 = inlined_call_operand.hbm [shape: c64[2,4,16,16], index: 0, kind: input, shape index: {}]   ;;  %s57_s1 = inlined_call_operand.vmem [shape: f32[2,4,16,16], index: 1, kind: output, shape index: {}]  }
   0x1   :  { %s2_s8 = scalar_lea.hbm %s56_s0, 128 }
   0x2   :  { %3 = vsyncpa [#allocation0], 0  ;;  %s5_s9 = sshll.u32 %s2_s8, 4  ;;  %s7_s12 = sshll.u32 %s57_s1, 4  ;;  %s6_s9 = int_to_ptr.hbm [resolvable:$true] %s5_s9  ;;  %s8_s12 = int_to_ptr.vmem [resolvable:$true] %s7_s12 }
   0x3   :  { %10 = dma.hbm_to_vmem [thread:$0]  %s6_s9, 2048, %s8_s12, [#allocation0] }
   0x4   :  { %38 = dma.done.wait [#allocation0], 2048  }
   0x5   :  { %39 = vsyncadd [#allocation0], 4294965248 }
   0x6   :  { %13 = vsyncpa [#allocation0], 1 }

// kernel: custom-call
= control target key start
LH: loop header
LB: loop body
LE: loop exit
PB: predicated region body
PF: predicated region fallthrough
CT: control target
= control target key end

     0   :  { %2 = vsyncpa [#allocation0], 0  ;;  %s55_s0 = inlined_call_operand.hbm [shape: c64[2,4,16,16], index: 0, kind: input, shape index: {}]   ;;  %s56_s1 = inlined_call_operand.vmem [shape: f32[2,4,16,16], index: 1, kind: output, shape index: {}]  }
   0x1   :  { %s4_s8 = sshll.u32 %s55_s0, 4  ;;  %s6_s11 = sshll.u32 %s56_s1, 4  ;;  %s5_s8 = int_to_ptr.hbm [resolvable:$true] %s4_s8  ;;  %s7_s11 = int_to_ptr.vmem [resolvable:$true] %s6_s11 }
   0x2   :  { %9 = dma.hbm_to_vmem [thread:$0]  %s5_s8, 2048, %s7_s11, [#allocation0] }
   0x3   :  { %37 = dma.done.wait [#allocation0], 2048  }
   0x4   :  { %38 = vsyncadd [#allocation0], 4294965248 }
   0x5   :  { %12 = vsyncpa [#allocation0], 1 }

// kernel: _l2normc_impl.1
= control target key start
LH: loop header
LB: loop body
LE: loop exit
PB: predicated region body
PF: predicated region fallthrough
CT: control target
= control target key end

     0   :  { %s333_s6 = smov 0   ;;  %s335_s7 = smov 0   ;;  %s366_s0 = inlined_call_operand.vmem [shape: f32[2,8,256], index: 0, kind: input, shape index: {}]   ;;  %s367_s1 = inlined_call_operand.vmem [shape: f32[2,1,256], index: 1, kind: output, shape index: {}]  }
   0x1   :  { %s337_s8 = smov 0  }
   0x2 LB: > { %s23_s9 = sadd.s32 1, %s317_s7  ;;  %p268_p0 = scmp.ge.s32.totalorder %s321_s8, 1  ;;  %s321_s8 = sphi %s337_s8, %s11_s8   ;;  %s317_s7 = sphi %s335_s7, %s369_s7   ;;  %s313_s6 = sphi %s333_s6, %s368_s6  }
   0x3   : > { %p25_p1 = scmp.ge.s32.totalorder %s23_s9, 2  ;;  %p108_p2 = scmp.lt.s32.totalorder %s321_s8, 3 }
   0x5   : > { %s371_s9 = smov (%p25_p1, %s23_s9), 0  ;;  %p109_p3 = pnand %p268_p0, %p108_p2 }
   0x6   : > { %p136_p4 = scmp.lt.s32.totalorder (!%p109_p3), %s313_s6, 1 }
   0x7   : > { %112 = sbr.rel (%p109_p3) target bundleno = 34 (0x22), region = 24 }
   0xc   : > { %s373_s6 = smov (!%p136_p4, %s313_s6), 1  ;;  %v178_v14 = vlaneseq  ;;  %vm175_vm0 = vcmask 1040384  }
   0xd   : > { %s274_s10 = sshll.u32 %s373_s6, 4  ;;  %s271_s14 = sshll.u32 %s373_s6, 1 }
   0xe   : > { %s143_s13 = scalar_lea.vmem %s366_s0, %s274_s10  ;;  %s152_s17 = scalar_lea.vmem %s367_s1, %s271_s14  ;;  %vm180_vm1 = vcmp.lt.s32.totalorder %v178_v14, 256 }
   0xf   : > { %v154_v0 = vld [vmem:[%s143_s13] sm:$0xff]  ;;  %v155_v1 = vld [vmem:[%s143_s13 + $0x8] sm:$0xff] }
  0x10   : > { %v156_v2 = vmul.f32 %v154_v0, %v154_v0  ;;  %v157_v3 = vmul.f32 %v155_v1, %v155_v1 }
  0x12   : > { %v158_v4 = vrot.slane %v156_v2, 4  ;;  %v164_v5 = vrot.slane %v157_v3, 4 }
  0x14   : > { %v159_v6 = vadd.f32 %v158_v4, %v156_v2  ;;  %v165_v7 = vadd.f32 %v164_v5, %v157_v3 }
  0x16   : > { %v160_v8 = vrot.slane %v159_v6, 2  ;;  %v166_v9 = vrot.slane %v165_v7, 2 }
  0x18   : > { %v161_v10 = vadd.f32 %v160_v8, %v159_v6  ;;  %v167_v11 = vadd.f32 %v166_v9, %v165_v7 }
  0x1a   : > { %v162_v12 = vrot.slane %v161_v10, 1  ;;  %v168_v13 = vrot.slane %v167_v11, 1 }
  0x1c   : > { %v163_v15 = vadd.f32 %v162_v12, %v161_v10  ;;  %v169_v16 = vadd.f32 %v168_v13, %v167_v11 }
  0x1e   : > { %v174_v17 = vrot.slane %v169_v16, 7 }
  0x20   : > { %v176_v18 = vsel %vm175_vm0, %v163_v15, %v174_v17 }
  0x21   : > { %182 = vst.msk [vmem:[%s152_s17] sm:$0x3] %vm180_vm1, %v176_v18 }
  0x22 PF: > { %s11_s8 = sadd.s32 1, %s321_s8   ;;  %s368_s6 = smov %s317_s7 }
  0x23   : > { %p8_p5 = scmp.ge.s32.totalorder %s11_s8, 4   ;;  %s369_s7 = smov %s371_s9 }
  0x25   :  { %10 = sbr.rel (!%p8_p5) target bundleno = 2 (0x2), region = 54 }

</bundles_post_ra>
